<compile_context>
chip_gen: v5e
topology: v5e:2x2
jax: 0.10.0
libtpu: 0.0.40
codegen_flags: <defaults>
</compile_context>

<pallas_src>
import functools

import jax
import jax.numpy as jnp
from jax.experimental import pallas as pl
from jax.experimental.pallas import tpu as pltpu


def _dice_rows_kernel(logits_ref, targets_ref, dice_ref, inter_ref, union_ref,
                      *, smooth, spatial, spatial_tile):
    """Processes one (row_block, spatial_tile) tile; spatial axis is innermost."""
    k = pl.program_id(1)

    @pl.when(k == 0)
    def _init():
        inter_ref[...] = jnp.zeros_like(inter_ref)
        union_ref[...] = jnp.zeros_like(union_ref)

    # Upcast AFTER the DMA so HBM traffic stays in the narrow input dtype.
    x = logits_ref[...].astype(jnp.float32)
    t = targets_ref[...].astype(jnp.float32)
    probs = jax.nn.sigmoid(x)                              # EUP transcendental

    if spatial % spatial_tile != 0:
        # Ragged spatial tail: the last tile's out-of-bounds lanes hold
        # unspecified data -- zero both contributions (one VPU select, free
        # under the DMA bound).
        col = k * spatial_tile + jax.lax.broadcasted_iota(jnp.int32, x.shape, 1)
        valid = col < spatial
        probs = jnp.where(valid, probs, 0.0)
        t = jnp.where(valid, t, 0.0)

    inter_ref[...] += jnp.sum(probs * t, axis=1, keepdims=True)
    union_ref[...] += jnp.sum(probs + t, axis=1, keepdims=True)

    @pl.when(k == pl.num_programs(1) - 1)
    def _finalize():
        dice_ref[...] = ((2.0 * inter_ref[...] + smooth)
                         / (union_ref[...] + smooth))


def _vmem_input_budget_bytes():
    # ~1/8 of physical VMEM for the double-buffered input tiles, capped so the
    # kernel stays under the scoped-VMEM default on every generation
    # (v7x: 64 MiB physical -> 8 MiB budget; v5e/v6e: 128 MiB -> 16 MiB).
    try:
        vmem = pltpu.get_tpu_info().vmem_capacity_bytes
    except Exception:
        vmem = 64 * 1024 * 1024          # conservative fallback (v7x-sized)
    return int(min(16 * 1024 * 1024, max(4 * 1024 * 1024, vmem // 8)))


def _choose_row_block(rows):
    # Sublane-aligned row blocks; split the row axis so v7x's two TensorCores
    # both get work when there are enough rows.
    if rows <= 8:
        return rows                      # full-dim block (always legal)
    half = (((rows + 1) // 2) + 7) // 8 * 8
    return min(128, half)


def _choose_spatial_tile(row_block, spatial, bytes_per_elem_pair):
    budget = _vmem_input_budget_bytes()
    # 2 pipeline buffers per input; both inputs share the tile shape.
    max_ts = budget // (2 * row_block * bytes_per_elem_pair)
    max_ts = max(128, (max_ts // 128) * 128)
    # Absolute cap keeps several tiles in flight (pipelining) even for huge
    # H*W; larger cap on 128-MiB-VMEM chips (v5e/v6e), smaller on v7x.
    abs_cap = 8192 if budget >= 12 * 1024 * 1024 else 4096
    cap = min(max_ts, abs_cap)
    return spatial if spatial <= cap else cap


def dice_loss(logits, targets, smooth=1.0, *, spatial_tile=None):
    """Dice loss matching torch: 1 - mean over (N, C) of per-map dice."""
    n, c, h, w = logits.shape
    assert targets.shape == logits.shape
    rows, spatial = n * c, h * w

    # Keep native HBM dtypes (bf16 logits / bool / int8 targets are fine);
    # the kernel upcasts to f32 after the DMA.
    logits2d = logits.reshape(rows, spatial)
    targets2d = targets.reshape(rows, spatial)

    tr = _choose_row_block(rows)
    if spatial_tile is None:
        ts = _choose_spatial_tile(
            tr, spatial, logits2d.dtype.itemsize + targets2d.dtype.itemsize)
    else:
        ts = min(spatial, int(spatial_tile))
    assert ts == spatial or ts % 128 == 0, "spatial tile must be lane-aligned"

    grid = (pl.cdiv(rows, tr), pl.cdiv(spatial, ts))

    kernel = functools.partial(_dice_rows_kernel, smooth=float(smooth),
                               spatial=spatial, spatial_tile=ts)

    dice = pl.pallas_call(
        kernel,
        out_shape=jax.ShapeDtypeStruct((rows, 1), jnp.float32),
        grid_spec=pltpu.PrefetchScalarGridSpec(
            num_scalar_prefetch=0,
            grid=grid,
            in_specs=[
                pl.BlockSpec((tr, ts), lambda r, k: (r, k)),
                pl.BlockSpec((tr, ts), lambda r, k: (r, k)),
            ],
            out_specs=pl.BlockSpec((tr, 1), lambda r, k: (r, 0)),
            scratch_shapes=[
                pltpu.VMEM((tr, 1), jnp.float32),   # intersection accumulator
                pltpu.VMEM((tr, 1), jnp.float32),   # union accumulator
            ],
        ),
        compiler_params=pltpu.CompilerParams(
            dimension_semantics=("parallel", "arbitrary"),
            vmem_limit_bytes=32 * 1024 * 1024),
    )(logits2d, targets2d)

    # Tiny epilogue over the N*C per-map dice values (needed once the row axis
    # is core-parallel); all heavy work happened inside the kernel.
    return 1.0 - jnp.mean(dice)


def _dice_loss_ref(logits, targets, smooth=1.0):
    probs = jax.nn.sigmoid(logits.astype(jnp.float32))
    t = targets.astype(jnp.float32)
    intersection = jnp.sum(probs * t, axis=(2, 3))
    union = jnp.sum(probs, axis=(2, 3)) + jnp.sum(t, axis=(2, 3))
    dice = (2.0 * intersection + smooth) / (union + smooth)
    return 1.0 - jnp.mean(dice)


if __name__ == "__main__":
    key = jax.random.PRNGKey(0)
    k1, k2, k3, k4 = jax.random.split(key, 4)

    # Small shapes consistent with the module's forward: (N, C, H, W).
    N, C, H, W = 2, 4, 16, 16
    logits = jax.random.normal(k1, (N, C, H, W), dtype=jnp.float32)
    targets = (jax.random.uniform(k2, (N, C, H, W)) > 0.5).astype(jnp.float32)

    loss = jax.block_until_ready(dice_loss(logits, targets, smooth=1.0))
    ref = _dice_loss_ref(logits, targets, smooth=1.0)
    assert jnp.allclose(loss, ref, atol=1e-5, rtol=1e-5), (loss, ref)

    # Extra check: multi-tile spatial axis with a ragged (masked) tail.
    H2, W2 = 16, 20                      # spatial = 320, not a multiple of 128
    logits2 = jax.random.normal(k3, (N, C, H2, W2), dtype=jnp.float32)
    targets2 = (jax.random.uniform(k4, (N, C, H2, W2)) > 0.5).astype(jnp.float32)
    loss2 = jax.block_until_ready(
        dice_loss(logits2, targets2, smooth=1.0, spatial_tile=128))
    ref2 = _dice_loss_ref(logits2, targets2, smooth=1.0)
    assert jnp.allclose(loss2, ref2, atol=1e-5, rtol=1e-5), (loss2, ref2)

    print("KERNEL_OK")
</pallas_src>

<mosaic_0001>
module attributes {stable_mosaic.version = 11 : i64} {
  func.func @_dice_rows_kernel(%arg0: i32, %arg1: i32, %arg2: memref<8x256xf32, #tpu.memory_space<vmem>>, %arg3: memref<8x256xf32, #tpu.memory_space<vmem>>, %arg4: memref<8x1xf32, #tpu.memory_space<vmem>>, %arg5: memref<8x1xf32, #tpu.memory_space<vmem>>, %arg6: memref<8x1xf32, #tpu.memory_space<vmem>>) attributes {dimension_semantics = [#tpu.dimension_semantics<parallel>, #tpu.dimension_semantics<arbitrary>], iteration_bounds = array<i64: 1, 1>, scalar_prefetch = 0 : i64, scratch_operands = 2 : i64, tpu.core_type = #tpu.core_type<tc>, window_params = [{transform_indices = @transform_0, window_bounds = array<i64: 8, 256>}, {transform_indices = @transform_1, window_bounds = array<i64: 8, 256>}, {transform_indices = @transform_2, window_bounds = array<i64: 8, 1>}]} {
    %c0_i32 = arith.constant 0 : i32
    %0 = arith.cmpi eq, %arg1, %c0_i32 : i32
    %1 = arith.extui %0 : i1 to i32
    %c0_i32_0 = arith.constant 0 : i32
    %2 = arith.cmpi ne, %1, %c0_i32_0 : i32
    scf.if %2 {
      %cst_16 = arith.constant 0.000000e+00 : f32
      %25 = vector.broadcast %cst_16 : f32 to vector<8x1xf32>
      %c0_17 = arith.constant 0 : index
      %c0_18 = arith.constant 0 : index
      %26 = vector.load %arg5[%c0_17, %c0_18] : memref<8x1xf32, #tpu.memory_space<vmem>>, vector<8x1xf32>
      tpu.vector_store %arg5[%c0_17, %c0_18], %25 {strides = array<i32>} : memref<8x1xf32, #tpu.memory_space<vmem>>, vector<8x1xf32>,
      %cst_19 = arith.constant 0.000000e+00 : f32
      %27 = vector.broadcast %cst_19 : f32 to vector<8x1xf32>
      %c0_20 = arith.constant 0 : index
      %c0_21 = arith.constant 0 : index
      %28 = vector.load %arg6[%c0_20, %c0_21] : memref<8x1xf32, #tpu.memory_space<vmem>>, vector<8x1xf32>
      tpu.vector_store %arg6[%c0_20, %c0_21], %27 {strides = array<i32>} : memref<8x1xf32, #tpu.memory_space<vmem>>, vector<8x1xf32>,
    } else {
    }
    %c0 = arith.constant 0 : index
    %c0_1 = arith.constant 0 : index
    %3 = vector.load %arg2[%c0, %c0_1] : memref<8x256xf32, #tpu.memory_space<vmem>>, vector<8x256xf32>
    %c0_2 = arith.constant 0 : index
    %c0_3 = arith.constant 0 : index
    %4 = vector.load %arg3[%c0_2, %c0_3] : memref<8x256xf32, #tpu.memory_space<vmem>>, vector<8x256xf32>
    %5 = arith.negf %3 : vector<8x256xf32>
    %6 = math.exp %5 : vector<8x256xf32>
    %cst = arith.constant 1.000000e+00 : f32
    %7 = vector.broadcast %cst : f32 to vector<8x256xf32>
    %8 = arith.addf %7, %6 : vector<8x256xf32>
    %9 = arith.divf %7, %8 : vector<8x256xf32>
    %c0_4 = arith.constant 0 : index
    %c0_5 = arith.constant 0 : index
    %10 = vector.load %arg5[%c0_4, %c0_5] : memref<8x1xf32, #tpu.memory_space<vmem>>, vector<8x1xf32>
    %11 = arith.mulf %9, %4 : vector<8x256xf32>
    %cst_6 = arith.constant dense<0.000000e+00> : vector<8xf32>
    %12 = vector.multi_reduction <add>, %11, %cst_6 [1] : vector<8x256xf32> to vector<8xf32>
    %13 = vector.shape_cast %12 : vector<8xf32> to vector<8x1xf32>
    %14 = arith.addf %10, %13 : vector<8x1xf32>
    %c0_7 = arith.constant 0 : index
    %c0_8 = arith.constant 0 : index
    %15 = vector.load %arg5[%c0_7, %c0_8] : memref<8x1xf32, #tpu.memory_space<vmem>>, vector<8x1xf32>
    tpu.vector_store %arg5[%c0_7, %c0_8], %14 {strides = array<i32>} : memref<8x1xf32, #tpu.memory_space<vmem>>, vector<8x1xf32>,
    %c0_9 = arith.constant 0 : index
    %c0_10 = arith.constant 0 : index
    %16 = vector.load %arg6[%c0_9, %c0_10] : memref<8x1xf32, #tpu.memory_space<vmem>>, vector<8x1xf32>
    %17 = arith.addf %9, %4 : vector<8x256xf32>
    %cst_11 = arith.constant dense<0.000000e+00> : vector<8xf32>
    %18 = vector.multi_reduction <add>, %17, %cst_11 [1] : vector<8x256xf32> to vector<8xf32>
    %19 = vector.shape_cast %18 : vector<8xf32> to vector<8x1xf32>
    %20 = arith.addf %16, %19 : vector<8x1xf32>
    %c0_12 = arith.constant 0 : index
    %c0_13 = arith.constant 0 : index
    %21 = vector.load %arg6[%c0_12, %c0_13] : memref<8x1xf32, #tpu.memory_space<vmem>>, vector<8x1xf32>
    tpu.vector_store %arg6[%c0_12, %c0_13], %20 {strides = array<i32>} : memref<8x1xf32, #tpu.memory_space<vmem>>, vector<8x1xf32>,
    %c0_i32_14 = arith.constant 0 : i32
    %22 = arith.cmpi eq, %arg1, %c0_i32_14 : i32
    %23 = arith.extui %22 : i1 to i32
    %c0_i32_15 = arith.constant 0 : i32
    %24 = arith.cmpi ne, %23, %c0_i32_15 : i32
    scf.if %24 {
      %c0_16 = arith.constant 0 : index
      %c0_17 = arith.constant 0 : index
      %25 = vector.load %arg5[%c0_16, %c0_17] : memref<8x1xf32, #tpu.memory_space<vmem>>, vector<8x1xf32>
      %cst_18 = arith.constant 2.000000e+00 : f32
      %26 = vector.broadcast %cst_18 : f32 to vector<8x1xf32>
      %27 = arith.mulf %26, %25 : vector<8x1xf32>
      %cst_19 = arith.constant 1.000000e+00 : f32
      %28 = vector.broadcast %cst_19 : f32 to vector<8x1xf32>
      %29 = arith.addf %27, %28 : vector<8x1xf32>
      %c0_20 = arith.constant 0 : index
      %c0_21 = arith.constant 0 : index
      %30 = vector.load %arg6[%c0_20, %c0_21] : memref<8x1xf32, #tpu.memory_space<vmem>>, vector<8x1xf32>
      %cst_22 = arith.constant 1.000000e+00 : f32
      %31 = vector.broadcast %cst_22 : f32 to vector<8x1xf32>
      %32 = arith.addf %30, %31 : vector<8x1xf32>
      %33 = arith.divf %29, %32 : vector<8x1xf32>
      %c0_23 = arith.constant 0 : index
      %c0_24 = arith.constant 0 : index
      %34 = vector.load %arg4[%c0_23, %c0_24] : memref<8x1xf32, #tpu.memory_space<vmem>>, vector<8x1xf32>
      tpu.vector_store %arg4[%c0_23, %c0_24], %33 {strides = array<i32>} : memref<8x1xf32, #tpu.memory_space<vmem>>, vector<8x1xf32>,
    } else {
    }
    return
  }
  func.func @transform_0(%arg0: i32, %arg1: i32) -> (i32, i32) {
    %c0_i32 = arith.constant 0 : i32
    return %arg0, %arg1 : i32, i32
  }
  func.func @transform_1(%arg0: i32, %arg1: i32) -> (i32, i32) {
    %c0_i32 = arith.constant 0 : i32
    return %arg0, %arg1 : i32, i32
  }
  func.func @transform_2(%arg0: i32, %arg1: i32) -> (i32, i32) {
    %c0_i32 = arith.constant 0 : i32
    %c0_i32_0 = arith.constant 0 : i32
    return %arg0, %c0_i32 : i32, i32
  }
}

</mosaic_0001>

<bundles_post_ra>
// kernel: tpu_custom_call.1
= control target key start
LH: loop header
LB: loop body
LE: loop exit
PB: predicated region body
PF: predicated region fallthrough
CT: control target
= control target key end

     0   :  { %7 = vsyncpa [#allocation5], 0  ;;  %s234_s0 = inlined_call_operand.hbm [shape: f32[8,256], index: 0, kind: input, shape index: {}]   ;;  %s235_s1 = inlined_call_operand.hbm [shape: f32[8,256], index: 1, kind: input, shape index: {}]   ;;  %s236_s2 = inlined_call_operand.vmem [shape: f32[8,1], index: 2, kind: output, shape index: {}]  }
   0x1   :  { %s14_s11 = sshll.u32 %s234_s0, 4  ;;  %s15_s11 = int_to_ptr.hbm [resolvable:$true] %s14_s11 }
   0x2   :  { %8 = vsyncpa [#allocation7], 0  ;;  %s202_s12 = smov [#allocation4]   ;;  %s25_s16 = sshll.u32 %s235_s1, 4  ;;  %s26_s16 = int_to_ptr.hbm [resolvable:$true] %s25_s16 }
   0x3   :  { %s16_s13 = sshll.u32 %s202_s12, 4  ;;  %s203_s17 = smov [#allocation6]   ;;  %s17_s13 = int_to_ptr.vmem [resolvable:$true] %s16_s13 }
   0x4   :  { %19 = dma.hbm_to_vmem [thread:$0]  %s15_s11, 256, %s17_s13, [#allocation5]  }
   0x5   :  { %s27_s18 = sshll.u32 %s203_s17, 4  ;;  %s28_s18 = int_to_ptr.vmem [resolvable:$true] %s27_s18 }
   0x6   :  { %30 = dma.hbm_to_vmem [thread:$0]  %s26_s16, 256, %s28_s18, [#allocation7]  }
   0x7   :  { %198 = dma.done.wait [#allocation5], 256  }
   0x8   :  { %199 = vsyncadd [#allocation5], 4294967040 }
   0x9   :  { %200 = dma.done.wait [#allocation7], 256  }
   0xa   :  { %201 = vsyncadd [#allocation7], 4294967040  ;;  %v46_v0 = vld [vmem:[#allocation4] sm:$0xff]  ;;  %v47_v1 = vld [vmem:[#allocation4 + $0x8] sm:$0xff]  ;;  %vm43_vm0 = vcmask 7168   ;;  %v204_v8 = vmov 0.0  }
   0xb   :  { %v135_v2 = vmul.f32 -1.442695, %v46_v0  ;;  %v136_v3 = vmul.f32 -1.442695, %v47_v1  ;;  %45 = vst.msk [vmem:[#allocation3] sm:$0xff] %vm43_vm0, %v204_v8  ;;  %v48_v24 = vld [vmem:[#allocation6] sm:$0xff] }
   0xc   :  { %44 = vst.msk [vmem:[#allocation2] sm:$0xff] %vm43_vm0, %v204_v8  ;;  %v49_v26 = vld [vmem:[#allocation6 + $0x8] sm:$0xff] }
   0xd   :  { %140 = vpow2.f32 %v135_v2 }
   0xe   :  { %142 = vpow2.f32 %v136_v3 }
  0x12   :  { %v97_v37 = vld [vmem:[#allocation3] sm:$0xff] }
  0x13   :  { %v141_v4 = vpop.eup %140  ;;  %v88_v40 = vld [vmem:[#allocation2] sm:$0xff] }
  0x14   :  { %v143_v5 = vpop.eup %142  ;;  %v56_v6 = vadd.f32 1.0, %v141_v4 }
  0x15   :  { %v57_v7 = vadd.f32 1.0, %v143_v5 }
  0x16   :  { %144 = vrcp.f32 %v56_v6  ;;  %vm63_vm1 = vweird.f32 %v56_v6  ;;  %v69_v12 = vand.u32 2147483648, %v56_v6  ;;  %v67_v15 = vand.u32 2147483647, %v56_v6 }
  0x17   :  { %146 = vrcp.f32 %v57_v7  ;;  %v84_v16 = vand.u32 2147483648, %v57_v7  ;;  %vm78_vm3 = vweird.f32 %v57_v7  ;;  %v82_v18 = vand.u32 2147483647, %v57_v7 }
  0x18   :  { %v70_v20 = vor.u32 1.1754944e-38, %v69_v12  ;;  %vm68_vm6 = vcmp.eq.f32.partialorder %v67_v15, 8.507059e+37 }
  0x19   :  { %v85_v23 = vor.u32 1.1754944e-38, %v84_v16  ;;  %vm83_vm8 = vcmp.eq.f32.partialorder %v82_v18, 8.507059e+37 }
  0x1c   :  { %v145_v9 = vpop.eup %144 }
  0x1d   :  { %v147_v10 = vpop.eup %146  ;;  %v59_v11 = vmul.f32 %v145_v9, %v56_v6  ;;  %vm64_vm2 = vweird.f32 %v145_v9 }
  0x1e   :  { %v74_v13 = vmul.f32 %v147_v10, %v57_v7  ;;  %vm79_vm4 = vweird.f32 %v147_v10  ;;  %vm65_vm5 = vmor %vm63_vm1, %vm64_vm2 }
  0x1f   :  { %v60_v14 = vsub.f32 1.0, %v59_v11  ;;  %vm80_vm7 = vmor %vm78_vm3, %vm79_vm4 }
  0x20   :  { %v75_v17 = vsub.f32 1.0, %v74_v13 }
  0x21   :  { %v61_v19 = vmul.f32 %v145_v9, %v60_v14 }
  0x22   :  { %v76_v21 = vmul.f32 %v147_v10, %v75_v17 }
  0x23   :  { %v62_v22 = vadd.f32 %v145_v9, %v61_v19 }
  0x24   :  { %v77_v25 = vadd.f32 %v147_v10, %v76_v21 }
  0x25   :  { %v66_v27 = vsel %vm65_vm5, %v145_v9, %v62_v22 }
  0x26   :  { %v71_v28 = vsel %vm68_vm6, %v70_v20, %v66_v27  ;;  %v81_v29 = vsel %vm80_vm7, %v147_v10, %v77_v25 }
  0x27   :  { %v86_v30 = vsel %vm83_vm8, %v85_v23, %v81_v29  ;;  %v98_v31 = vadd.f32 %v71_v28, %v48_v24  ;;  %v89_v34 = vmul.f32 %v71_v28, %v48_v24 }
  0x28   :  { %v99_v32 = vadd.f32 %v86_v30, %v49_v26  ;;  %v90_v35 = vmul.f32 %v86_v30, %v49_v26 }
  0x2a   :  { %v100_v33 = vadd.f32 %v99_v32, %v98_v31  ;;  %v91_v36 = vadd.f32 %v90_v35, %v89_v34 }
  0x2c   :  { %101 = vadd.xlane.f32.xlu0 %v100_v33 }
  0x34   :  { %92 = vadd.xlane.f32.xlu0 %v91_v36 }
  0x9f   :  { %v102_v38 = vpop.xlane.xlu0 %101 }
  0xa0   :  { %v103_v39 = vadd.f32 %v102_v38, %v97_v37 }
  0xa2   :  { %104 = vst.msk [vmem:[#allocation3] sm:$0xff] %vm43_vm0, %v103_v39 }
  0xa7   :  { %v93_v41 = vpop.xlane.xlu0 %92 }
  0xa8   :  { %v94_v42 = vadd.f32 %v93_v41, %v88_v40 }
  0xa9   :  { %v111_v43 = vld [vmem:[#allocation3] sm:$0xff] }
  0xaa   :  { %v112_v44 = vadd.f32 1.0, %v111_v43  ;;  %96 = vst.msk [vmem:[#allocation2] sm:$0xff] %vm43_vm0, %v94_v42 }
  0xac   :  { %148 = vrcp.f32 %v112_v44  ;;  %v124_v50 = vand.u32 2147483648, %v112_v44  ;;  %v122_v52 = vand.u32 2147483647, %v112_v44  ;;  %vm118_vm10 = vweird.f32 %v112_v44 }
  0xae   :  { %v125_v55 = vor.u32 1.1754944e-38, %v124_v50  ;;  %vm123_vm12 = vcmp.eq.f32.partialorder %v122_v52, 8.507059e+37 }
  0xb1   :  { %v108_v46 = vld [vmem:[#allocation2] sm:$0xff] }
  0xb2   :  { %v149_v45 = vpop.eup %148  ;;  %v109_v49 = vmul.f32 2.0, %v108_v46 }
  0xb3   :  { %v114_v47 = vmul.f32 %v149_v45, %v112_v44  ;;  %vm119_vm9 = vweird.f32 %v149_v45 }
  0xb4   :  { %v110_v53 = vadd.f32 1.0, %v109_v49  ;;  %vm120_vm11 = vmor %vm118_vm10, %vm119_vm9 }
  0xb5   :  { %v115_v48 = vsub.f32 1.0, %v114_v47 }
  0xb7   :  { %v116_v51 = vmul.f32 %v149_v45, %v115_v48 }
  0xb9   :  { %v117_v54 = vadd.f32 %v149_v45, %v116_v51 }
  0xbb   :  { %v121_v56 = vsel %vm120_vm11, %v149_v45, %v117_v54 }
  0xbc   :  { %v126_v57 = vsel %vm123_vm12, %v125_v55, %v121_v56 }
  0xbd   :  { %v127_v58 = vmul.f32 %v126_v57, %v110_v53 }
  0xbf   :  { %128 = vst.msk [vmem:[%s236_s2] sm:$0xff] %vm43_vm0, %v127_v58 }
  0xc0   :  { %133 = vsyncpa [#allocation5], 1 }
  0xc1   :  { %134 = vsyncpa [#allocation7], 1 }

</bundles_post_ra>
